<compile_context>
chip_gen: v7x
topology: tpu7x:2x2x1
jax: 0.10.0
libtpu: 0.0.40
codegen_flags: <defaults>
</compile_context>

<pallas_src>
import functools

import jax
import jax.numpy as jnp
from jax import lax
from jax.experimental import pallas as pl
from jax.experimental.pallas import tpu as pltpu

_LANE = 128
_SMALL_INPUT_BYTES = 256 * 1024            # below this, plain XLA wins


def _bce_loss_f32(x, y):
    # Numerically-stable BCE with logits (matches torch
    # F.binary_cross_entropy_with_logits, reduction='none'):
    #   loss = max(x, 0) - x*y + log(1 + exp(-|x|))
    return jnp.maximum(x, 0.0) - x * y + jnp.log1p(jnp.exp(-jnp.abs(x)))


@functools.lru_cache(maxsize=None)
def _hw_budgets():
    """(target_block_bytes, vmem_limit_bytes), generation-aware."""
    target_block = 2 * 1024 * 1024          # v7x-safe default (64 MiB VMEM)
    vmem_limit = 32 * 1024 * 1024
    try:
        info = pltpu.get_tpu_info()
        vmem = int(getattr(info, "vmem_capacity_bytes", 0) or 0)
        if vmem >= 100 * 1024 * 1024:        # v5e / v6e: 128 MiB VMEM
            target_block = 4 * 1024 * 1024
            vmem_limit = 64 * 1024 * 1024    # explicit: v5e default scope is 16 MiB
    except Exception:
        pass                                 # conservative defaults off-TPU
    return target_block, vmem_limit


def _choose_layout(n, target_block_bytes):
    """Lane-dense 2D slab layout for n flat elements.

    Returns (cols, rows, tile_rows, aligned_n).  Only the 128-aligned prefix
    (aligned_n elements) is processed by Pallas; the <cols remainder is
    handled in the wrapper by plain XLA (no pad / slice HBM copies)."""
    cols = _LANE
    for c in (2048, 1024, 512, 256, 128):
        if n % c == 0:
            cols = c
            break
    aligned_n = (n // cols) * cols
    rows = aligned_n // cols
    if rows == 0:
        return cols, 0, 0, 0
    align = 8
    # Blocks sized by f32 compute footprint so in-kernel intermediates are bounded.
    target_rows = max(align, (target_block_bytes // (cols * 4)) // align * align)
    # Prefer >= 2 grid steps so the "parallel" axis feeds both v7x TensorCores.
    if rows >= 2 * align:
        target_rows = min(target_rows, max(align, (rows // 2 // align) * align))
    tile_rows = rows if rows <= target_rows else target_rows
    return cols, rows, tile_rows, aligned_n


def _fold_rows(x, sub):
    """Fold (tile_rows, cols) -> (sub, cols) by summing sublane groups."""
    r, c = x.shape
    if r == sub:
        return x
    return jnp.sum(x.reshape(r // sub, sub, c), axis=0)


# --------------------------------------------------------------------------
# Kernels (scale = loss_weight / avg_factor arrives via scalar prefetch SMEM).
# --------------------------------------------------------------------------
def _bce_none_kernel(scale_ref, pred_ref, tgt_ref, out_ref):
    x = pred_ref[...].astype(jnp.float32)
    y = tgt_ref[...].astype(jnp.float32)
    out_ref[...] = (_bce_loss_f32(x, y) * scale_ref[0]).astype(out_ref.dtype)


def _bce_sum_kernel(scale_ref, pred_ref, tgt_ref, out_ref, acc_ref, *,
                    rows, tile_rows, inner, ragged, sub):
    o = pl.program_id(0)      # parallel axis (one accumulator / output per o)
    i = pl.program_id(1)      # reduction axis

    @pl.when(i == 0)
    def _():
        acc_ref[...] = jnp.zeros_like(acc_ref)

    x = pred_ref[...].astype(jnp.float32)
    y = tgt_ref[...].astype(jnp.float32)
    loss = _bce_loss_f32(x, y)

    if ragged:
        b = o * inner + i                      # logical row-block index
        row0 = b * tile_rows
        is_full = row0 + tile_rows <= rows     # fully in-bounds block?

        @pl.when(is_full)
        def _():
            acc_ref[...] += _fold_rows(loss, sub)

        @pl.when(jnp.logical_not(is_full))     # only boundary blocks pay for the mask
        def _():
            r = lax.broadcasted_iota(jnp.int32, loss.shape, 0) + row0
            acc_ref[...] += _fold_rows(jnp.where(r < rows, loss, 0.0), sub)
    else:
        acc_ref[...] += _fold_rows(loss, sub)

    @pl.when(i == inner - 1)
    def _():
        val = jnp.sum(acc_ref[...]) * scale_ref[0]
        out_ref[...] = jnp.broadcast_to(val, out_ref.shape)


# --------------------------------------------------------------------------
# pallas_call wrappers
# --------------------------------------------------------------------------
def _pallas_bce_none(p2, t2, scale_arr, rows, cols, tile_rows, vmem_limit, out_dtype):
    grid = (pl.cdiv(rows, tile_rows),)
    block = (tile_rows, cols)
    return pl.pallas_call(
        _bce_none_kernel,
        out_shape=jax.ShapeDtypeStruct((rows, cols), out_dtype),
        grid_spec=pltpu.PrefetchScalarGridSpec(
            num_scalar_prefetch=1,
            grid=grid,
            in_specs=[pl.BlockSpec(block, lambda i, s: (i, 0)),
                      pl.BlockSpec(block, lambda i, s: (i, 0))],
            out_specs=pl.BlockSpec(block, lambda i, s: (i, 0)),
        ),
        compiler_params=pltpu.CompilerParams(
            dimension_semantics=("parallel",),
            vmem_limit_bytes=vmem_limit,
        ),
    )(scale_arr, p2, t2)


def _pallas_bce_sum(p2, t2, scale_arr, rows, cols, tile_rows, vmem_limit):
    total_blocks = pl.cdiv(rows, tile_rows)
    outer = 2 if total_blocks >= 2 else 1              # split across v7x cores
    inner = pl.cdiv(total_blocks, outer)
    ragged = (rows % tile_rows != 0) or (outer * inner != total_blocks)
    sub = 8 if tile_rows % 8 == 0 else tile_rows
    max_blk = total_blocks - 1
    block = (tile_rows, cols)

    def in_map(o, i, s):
        # Clamp so padded iterations never read past the array; the in-kernel
        # mask (keyed on the *unclamped* index) zeroes their contribution.
        return (jnp.minimum(o * inner + i, max_blk), 0)

    partials = pl.pallas_call(
        functools.partial(_bce_sum_kernel, rows=rows, tile_rows=tile_rows,
                          inner=inner, ragged=ragged, sub=sub),
        out_shape=jax.ShapeDtypeStruct((outer, 8, _LANE), jnp.float32),
        grid_spec=pltpu.PrefetchScalarGridSpec(
            num_scalar_prefetch=1,
            grid=(outer, inner),
            in_specs=[pl.BlockSpec(block, in_map),
                      pl.BlockSpec(block, in_map)],
            out_specs=pl.BlockSpec((1, 8, _LANE), lambda o, i, s: (o, 0, 0)),
            scratch_shapes=[pltpu.VMEM((sub, cols), jnp.float32)],
        ),
        compiler_params=pltpu.CompilerParams(
            dimension_semantics=("parallel", "arbitrary"),
            vmem_limit_bytes=vmem_limit,
        ),
    )(scale_arr, p2, t2)
    return jnp.sum(partials[:, 0, 0])


# --------------------------------------------------------------------------
# Public forward
# --------------------------------------------------------------------------
@functools.partial(jax.jit, static_argnames=("reduction", "use_pallas"))
def cross_entropy_loss(pred, target, loss_weight=1.0, reduction="none",
                       avg_factor=1.0, use_pallas=None):
    """Forward of CrossEntropyLoss(loss_type='bce_use_sigmoid')."""
    if reduction is None:
        reduction = "none"
    assert reduction in ("none", "mean", "sum")
    assert pred.shape == target.shape, f"expect {pred.shape} == {target.shape}"
    if pred.shape[0] == 0:
        # Matches the torch module exactly: scalar `pred.sum() * 0.0`.
        return pred.sum() * 0.0

    orig_shape = pred.shape
    orig_dtype = pred.dtype
    n = pred.size
    scale = (jnp.asarray(loss_weight, jnp.float32)
             / jnp.asarray(avg_factor, jnp.float32))

    if use_pallas is None:
        use_pallas = n * jnp.dtype(orig_dtype).itemsize >= _SMALL_INPUT_BYTES

    target_block, vmem_limit = _hw_budgets()
    cols, rows, tile_rows, aligned_n = _choose_layout(n, target_block)

    if not use_pallas or rows == 0:
        loss = _bce_loss_f32(pred.astype(jnp.float32), target.astype(jnp.float32))
        if reduction == "mean":
            loss = jnp.mean(loss)
        elif reduction == "sum":
            loss = jnp.sum(loss)
        return (loss * scale).astype(orig_dtype)

    pred_flat = pred.reshape(-1)
    tgt_flat = target.reshape(-1)
    p2 = pred_flat[:aligned_n].reshape(rows, cols)
    t2 = tgt_flat[:aligned_n].reshape(rows, cols)
    scale_arr = scale.reshape(1)

    if reduction == "none":
        core = _pallas_bce_none(p2, t2, scale_arr, rows, cols, tile_rows,
                                vmem_limit, orig_dtype).reshape(-1)
        if aligned_n != n:  # tiny (<128 elem) remainder via plain XLA
            rx = pred_flat[aligned_n:].astype(jnp.float32)
            ry = tgt_flat[aligned_n:].astype(jnp.float32)
            rem = (_bce_loss_f32(rx, ry) * scale).astype(orig_dtype)
            core = jnp.concatenate([core, rem], axis=0)
        return core.reshape(orig_shape)

    # 'sum' / 'mean': fused in-kernel reduction (per-element loss never hits HBM).
    total = _pallas_bce_sum(p2, t2, scale_arr, rows, cols, tile_rows, vmem_limit)
    if aligned_n != n:
        rx = pred_flat[aligned_n:].astype(jnp.float32)
        ry = tgt_flat[aligned_n:].astype(jnp.float32)
        total = total + jnp.sum(_bce_loss_f32(rx, ry)) * scale
    if reduction == "mean":
        total = total / n
    return total.astype(orig_dtype)


def _reference(pred, target, loss_weight=1.0, reduction="none", avg_factor=1.0):
    loss = _bce_loss_f32(pred.astype(jnp.float32), target.astype(jnp.float32))
    if reduction == "mean":
        loss = jnp.mean(loss)
    elif reduction == "sum":
        loss = jnp.sum(loss)
    return loss_weight * loss / avg_factor


if __name__ == "__main__":
    key = jax.random.PRNGKey(0)
    k1, k2, k3, k4, k5, k6 = jax.random.split(key, 6)

    # 1) YOLOX-style NCHW logits & soft targets, forced through the Pallas path.
    x = jax.random.normal(k1, (2, 4, 16, 16), dtype=jnp.float32)
    t = jax.random.uniform(k2, (2, 4, 16, 16), dtype=jnp.float32)

    out = jax.block_until_ready(
        cross_entropy_loss(x, t, reduction="none", use_pallas=True))
    ref = _reference(x, t)
    assert out.shape == x.shape
    assert jnp.allclose(out, ref, atol=1e-5, rtol=1e-5), "none-path mismatch"

    s = jax.block_until_ready(
        cross_entropy_loss(x, t, reduction="sum", avg_factor=2.0, use_pallas=True))
    assert jnp.allclose(s, _reference(x, t, reduction="sum", avg_factor=2.0),
                        atol=1e-2, rtol=1e-4), "sum-path mismatch"

    m = jax.block_until_ready(
        cross_entropy_loss(x, t, reduction="mean", loss_weight=2.0, use_pallas=True))
    assert jnp.allclose(m, _reference(x, t, reduction="mean", loss_weight=2.0),
                        atol=1e-5, rtol=1e-5), "mean-path mismatch"

    # 2) Ragged row tiling (33 rows, tile 16): 2-way parallel split + boundary mask.
    x2 = jax.random.normal(k3, (33, 128), dtype=jnp.float32)
    t2 = jax.random.uniform(k4, (33, 128), dtype=jnp.float32)
    for red, kw in (("none", {}),
                    ("sum", dict(loss_weight=0.5, avg_factor=3.0)),
                    ("mean", dict(loss_weight=0.5, avg_factor=3.0))):
        got = jax.block_until_ready(
            cross_entropy_loss(x2, t2, reduction=red, use_pallas=True, **kw))
        want = _reference(x2, t2, reduction=red, **kw)
        assert jnp.allclose(got, want, atol=1e-2, rtol=1e-4), f"{red} ragged mismatch"

    # 3) Non-128-multiple element count: Pallas on aligned prefix + XLA remainder.
    x3 = jax.random.normal(k5, (3, 5, 7, 11), dtype=jnp.float32)
    t3 = jax.random.uniform(k6, (3, 5, 7, 11), dtype=jnp.float32)
    got = jax.block_until_ready(
        cross_entropy_loss(x3, t3, reduction="none", use_pallas=True))
    assert got.shape == x3.shape
    assert jnp.allclose(got, _reference(x3, t3), atol=1e-5, rtol=1e-5), "remainder none"
    gs = jax.block_until_ready(
        cross_entropy_loss(x3, t3, reduction="sum", use_pallas=True))
    assert jnp.allclose(gs, _reference(x3, t3, reduction="sum"),
                        atol=1e-2, rtol=1e-4), "remainder sum"

    # 4) Default dispatch (tiny input -> plain XLA fallback) also matches.
    d = jax.block_until_ready(cross_entropy_loss(x, t, reduction="none"))
    assert jnp.allclose(d, ref, atol=1e-5, rtol=1e-5), "fallback mismatch"

    print("KERNEL_OK")
</pallas_src>

<mosaic_0001>
module attributes {stable_mosaic.version = 11 : i64} {
  func.func @_bce_none_kernel(%arg0: i32, %arg1: memref<1xf32, #tpu.memory_space<smem>>, %arg2: memref<1x2048xf32, #tpu.memory_space<vmem>>, %arg3: memref<1x2048xf32, #tpu.memory_space<vmem>>, %arg4: memref<1x2048xf32, #tpu.memory_space<vmem>>) attributes {dimension_semantics = [#tpu.dimension_semantics<parallel>], iteration_bounds = array<i64: 1>, scalar_prefetch = 1 : i64, scratch_operands = 0 : i64, tpu.core_type = #tpu.core_type<tc>, window_params = [{transform_indices = @transform_0, window_bounds = array<i64: 1, 2048>}, {transform_indices = @transform_1, window_bounds = array<i64: 1, 2048>}, {transform_indices = @transform_2, window_bounds = array<i64: 1, 2048>}]} {
    %c0 = arith.constant 0 : index
    %c0_0 = arith.constant 0 : index
    %0 = vector.load %arg2[%c0, %c0_0] : memref<1x2048xf32, #tpu.memory_space<vmem>>, vector<1x2048xf32>
    %c0_1 = arith.constant 0 : index
    %c0_2 = arith.constant 0 : index
    %1 = vector.load %arg3[%c0_1, %c0_2] : memref<1x2048xf32, #tpu.memory_space<vmem>>, vector<1x2048xf32>
    %cst = arith.constant 0.000000e+00 : f32
    %2 = vector.broadcast %cst : f32 to vector<1x2048xf32>
    %3 = arith.maximumf %0, %2 : vector<1x2048xf32>
    %4 = arith.mulf %0, %1 : vector<1x2048xf32>
    %5 = arith.subf %3, %4 : vector<1x2048xf32>
    %6 = math.absf %0 : vector<1x2048xf32>
    %cst_3 = arith.constant 0.000000e+00 : f32
    %7 = vector.broadcast %cst_3 : f32 to vector<1x2048xf32>
    %8 = arith.subf %7, %6 : vector<1x2048xf32>
    %9 = math.exp %8 : vector<1x2048xf32>
    %10 = math.log1p %9 : vector<1x2048xf32>
    %11 = arith.addf %5, %10 : vector<1x2048xf32>
    %c0_4 = arith.constant 0 : index
    %12 = memref.load %arg1[%c0_4] : memref<1xf32, #tpu.memory_space<smem>>
    %13 = vector.broadcast %12 : f32 to vector<1x2048xf32>
    %14 = arith.mulf %11, %13 : vector<1x2048xf32>
    %c0_5 = arith.constant 0 : index
    %c0_6 = arith.constant 0 : index
    %15 = vector.load %arg4[%c0_5, %c0_6] : memref<1x2048xf32, #tpu.memory_space<vmem>>, vector<1x2048xf32>
    tpu.vector_store %arg4[%c0_5, %c0_6], %14 {strides = array<i32>} : memref<1x2048xf32, #tpu.memory_space<vmem>>, vector<1x2048xf32>,
    return
  }
  func.func @transform_0(%arg0: i32, %arg1: memref<1xf32, #tpu.memory_space<smem>>) -> (i32, i32) {
    %c0_i32 = arith.constant 0 : i32
    %c0_i32_0 = arith.constant 0 : i32
    return %arg0, %c0_i32 : i32, i32
  }
  func.func @transform_1(%arg0: i32, %arg1: memref<1xf32, #tpu.memory_space<smem>>) -> (i32, i32) {
    %c0_i32 = arith.constant 0 : i32
    %c0_i32_0 = arith.constant 0 : i32
    return %arg0, %c0_i32 : i32, i32
  }
  func.func @transform_2(%arg0: i32, %arg1: memref<1xf32, #tpu.memory_space<smem>>) -> (i32, i32) {
    %c0_i32 = arith.constant 0 : i32
    %c0_i32_0 = arith.constant 0 : i32
    return %arg0, %c0_i32 : i32, i32
  }
}

</mosaic_0001>

<bundles_post_ra>
// kernel: cross_entropy_loss.1
= control target key start
LH: loop header
LB: loop body
LE: loop exit
PB: predicated region body
PF: predicated region fallthrough
CT: control target
= control target key end

     0   :  { %s110_s1 = inlined_call_operand.vmem [shape: f32[1,2048], index: 1, kind: input, shape index: {}]   ;;  %s111_s2 = inlined_call_operand.vmem [shape: f32[1,2048], index: 2, kind: input, shape index: {}]   ;;  %s112_s0 = inlined_call_operand.<no memory space> [shape: f32[1], index: 0, kind: input, shape index: {}]   ;;  %s113_s3 = inlined_call_operand.vmem [shape: f32[1,2048], index: 3, kind: output, shape index: {}]  }
   0x1   :  { %v13_v0 = vld [vmem:[%s110_s1] sm:$0xff]  ;;  %v14_v1 = vld [vmem:[%s110_s1 + $0x8] sm:$0xff]  ;;  %v52_v33 = vstv %s112_s0 }
   0x2   :  { %v23_v2 = vand.u32 2147483647, %v13_v0  ;;  %v24_v3 = vand.u32 2147483647, %v14_v1  ;;  %v15_v14 = vld [vmem:[%s111_s2] sm:$0xff]  ;;  %v16_v15 = vld [vmem:[%s111_s2 + $0x8] sm:$0xff] }
   0x3   :  { %v17_v17 = vmax.f32 %v13_v0, 0.0  ;;  %v19_v18 = vmul.f32 %v15_v14, %v13_v0  ;;  %v18_v21 = vmax.f32 %v14_v1, 0.0  ;;  %v20_v22 = vmul.f32 %v16_v15, %v14_v1 }
   0x4   :  { %v25_v4 = vsub.f32 0.0, %v23_v2  ;;  %v26_v5 = vsub.f32 0.0, %v24_v3 }
   0x5   :  { %v21_v26 = vsub.f32 %v17_v17, %v19_v18  ;;  %v22_v30 = vsub.f32 %v18_v21, %v20_v22 }
   0x6   :  { %v27_v6 = vmul.f32 1.442695, %v25_v4  ;;  %v29_v7 = vmul.f32 1.442695, %v26_v5 }
   0x8   :  { %61 = vpow2.f32 %v27_v6 }
   0x9   :  { %63 = vpow2.f32 %v29_v7 }
  0x12   :  { %v62_v8 = vpop.eup %61 }
  0x13   :  { %v64_v9 = vpop.eup %63  ;;  %v31_v10 = vadd.f32 1.0, %v62_v8  ;;  %v34_v12 = vmul.f32 -0.5, %v62_v8  ;;  %v37_v19 = vand.u32 2147483647, %v62_v8 }
  0x14   :  { %v40_v11 = vadd.f32 1.0, %v64_v9  ;;  %v43_v13 = vmul.f32 -0.5, %v64_v9  ;;  %v46_v23 = vand.u32 2147483647, %v64_v9 }
  0x15   :  { %65 = vlog2.f32 %v31_v10  ;;  %v35_v16 = vadd.f32 1.0, %v34_v12  ;;  %vm38_vm0 = vcmp.lt.f32.partialorder %v37_v19, 0.0004427343 }
  0x16   :  { %67 = vlog2.f32 %v40_v11  ;;  %v44_v20 = vadd.f32 1.0, %v43_v13  ;;  %vm47_vm1 = vcmp.lt.f32.partialorder %v46_v23, 0.0004427343 }
  0x17   :  { %v36_v24 = vmul.f32 %v62_v8, %v35_v16 }
  0x18   :  { %v45_v27 = vmul.f32 %v64_v9, %v44_v20 }
  0x1f   :  { %v66_v25 = vpop.eup %65 }
  0x20   :  { %v68_v28 = vpop.eup %67  ;;  %v33_v29 = vmul.f32 0.6931472, %v66_v25 }
  0x21   :  { %v42_v31 = vmul.f32 0.6931472, %v68_v28 }
  0x22   :  { %v39_v32 = vsel %vm38_vm0, %v36_v24, %v33_v29 }
  0x23   :  { %v49_v34 = vadd.f32 %v39_v32, %v21_v26  ;;  %v48_v35 = vsel %vm47_vm1, %v45_v27, %v42_v31 }
  0x24   :  { %v50_v36 = vadd.f32 %v48_v35, %v22_v30 }
  0x25   :  { %v53_v37 = vmul.f32 %v52_v33, %v49_v34 }
  0x26   :  { %v54_v38 = vmul.f32 %v52_v33, %v50_v36 }
  0x27   :  { %55 = vst [vmem:[%s113_s3] sm:$0xff] %v53_v37 }
  0x28   :  { %56 = vst [vmem:[%s113_s3 + $0x8] sm:$0xff] %v54_v38 }

</bundles_post_ra>
